<compile_context>
chip_gen: v7x
topology: tpu7x:2x2x1
jax: 0.10.0
libtpu: 0.0.40
codegen_flags: <defaults>
</compile_context>

<pallas_src>
import jax
import jax.numpy as jnp
from jax.experimental import pallas as pl
from jax.experimental.pallas import tpu as pltpu

NUM_CLASSES = 10   # Fashion-MNIST classes
HIDDEN = 32        # feature-extractor hidden width (activation at stop_layer)

LANE = 128
ROW_ALIGN = 16                 # bf16 packed sublane tile = 16 rows
DEFAULT_BATCH_TILE = 2048
VMEM_BUDGET = 26 << 20         # per-step budget (double-buffered tiles + weights)
MEGACORE_MIN_BATCH = 512       # above this, force >=2 grid steps (v7x split)


def _round_up(x, m):
    return (x + m - 1) // m * m


def fashion_svm_kernel(x_ref, w1_ref, b1_ref, wsvm_ref, bsvm_ref, out_ref):
    """Fused: hidden = relu(x @ W1 + b1); out = hidden @ Wsvm + bsvm.

    x_ref    : [TB, D_pad]      f32    flattened image batch tile
    w1_ref   : [D_pad, H_pad]   bf16   feature extractor up to stop_layer
    b1_ref   : [1, H_pad]       f32
    wsvm_ref : [H_pad, C_pad]   bf16   SVM head (padded to 128 lanes)
    bsvm_ref : [1, C_pad]       f32
    out_ref  : [TB, C_pad]      bf16   lane-dense output (sliced to 10 outside)
    """
    # In-kernel bf16 cast of x (no extra HBM pass); f32 accumulation on MXU.
    x = x_ref[...].astype(jnp.bfloat16)
    h = jnp.dot(x, w1_ref[...], preferred_element_type=jnp.float32)
    # feature_extractor output at stop_layer == ReLU; flatten(1) is a no-op.
    h = jnp.maximum(h + b1_ref[...], 0.0)
    out = jnp.dot(h.astype(jnp.bfloat16), wsvm_ref[...],
                  preferred_element_type=jnp.float32)
    out_ref[...] = (out + bsvm_ref[...]).astype(out_ref.dtype)


def _pick_batch_tile(B, D_pad, H_pad, C_pad, batch_tile):
    """Batch tile: row-aligned, VMEM-budgeted, >=2 grid steps for big batches."""
    tb = min(batch_tile, _round_up(B, ROW_ALIGN))
    if B > MEGACORE_MIN_BATCH:
        # Ensure at least two grid steps so the "parallel" batch axis can be
        # split across the two TensorCores on v7x.
        tb = min(tb, _round_up(pl.cdiv(B, 2), ROW_ALIGN))
    # VMEM budget: double-buffered f32 x tile + bf16 out tile + resident
    # weights (x2 buffers) + f32 hidden intermediate.
    fixed = 2 * (D_pad * H_pad * 2 + H_pad * C_pad * 2 + (H_pad + C_pad) * 4)
    per_row = 2 * D_pad * 4 + 2 * C_pad * 2 + H_pad * 4
    max_rows = max((VMEM_BUDGET - fixed) // per_row, ROW_ALIGN)
    tb = min(tb, max_rows // ROW_ALIGN * ROW_ALIGN)
    return max(tb, ROW_ALIGN)


def fashion_svm_forward(x_nchw, params, *, batch_tile=DEFAULT_BATCH_TILE):
    """Flatten NCHW input and launch the fused Pallas kernel (batch-tiled)."""
    w1, b1, wsvm, bsvm = params            # already padded; weights bf16
    D_pad, H_pad = w1.shape
    C_pad = wsvm.shape[1]

    B = x_nchw.shape[0]
    D = 1
    for s in x_nchw.shape[1:]:
        D *= s
    x2d = x_nchw.reshape(B, D)             # torch .flatten(1) semantics

    TB = _pick_batch_tile(B, D_pad, H_pad, C_pad, batch_tile)

    # Pad batch rows only to the 16-row sublane tile (NOT to a full TB
    # multiple) and feature columns to the lane-aligned D_pad.  Stays f32 —
    # no separate cast pass; the kernel casts in VMEM.
    B_rows = _round_up(B, ROW_ALIGN)
    if B_rows != B or D_pad != D:
        x2d = jnp.pad(x2d, ((0, B_rows - B), (0, D_pad - D)))

    grid = (pl.cdiv(B_rows, TB),)          # partial tail block is masked

    flops = 2 * B_rows * (D_pad * H_pad + H_pad * C_pad)
    bytes_accessed = (B_rows * D_pad * 4          # x (f32, read once)
                      + D_pad * H_pad * 2         # w1 (bf16)
                      + H_pad * C_pad * 2         # wsvm (bf16)
                      + B_rows * C_pad * 2        # out (bf16)
                      + (H_pad + C_pad) * 4)      # biases

    # Explicit VMEM limit: actual footprint + margin, capped at the 32 MiB
    # default scoped limit (safe on v5e 128 / v6e 128 / v7x 64 MiB physical).
    vmem_bytes = (2 * TB * D_pad * 4 + 2 * TB * C_pad * 2
                  + 2 * (D_pad * H_pad * 2 + H_pad * C_pad * 2
                         + (H_pad + C_pad) * 4)
                  + TB * H_pad * 4)
    vmem_limit = min(max(vmem_bytes + (4 << 20), 16 << 20), 32 << 20)

    out = pl.pallas_call(
        fashion_svm_kernel,
        out_shape=jax.ShapeDtypeStruct((B_rows, C_pad), jnp.bfloat16),
        grid=grid,
        in_specs=[
            pl.BlockSpec((TB, D_pad), lambda i: (i, 0)),      # x: tiled on batch
            pl.BlockSpec((D_pad, H_pad), lambda i: (0, 0)),   # w1: resident
            pl.BlockSpec((1, H_pad), lambda i: (0, 0)),       # b1: resident
            pl.BlockSpec((H_pad, C_pad), lambda i: (0, 0)),   # wsvm: resident
            pl.BlockSpec((1, C_pad), lambda i: (0, 0)),       # bsvm: resident
        ],
        out_specs=pl.BlockSpec((TB, C_pad), lambda i: (i, 0)),
        compiler_params=pltpu.CompilerParams(
            dimension_semantics=("parallel",),
            vmem_limit_bytes=vmem_limit,
        ),
        cost_estimate=pl.CostEstimate(
            flops=flops, transcendentals=0, bytes_accessed=bytes_accessed),
    )(x2d, w1, b1, wsvm, bsvm)

    # Strip batch-row and class padding; return f32 logits (module interface).
    return out[:B, :NUM_CLASSES].astype(jnp.float32)


def init_params(key, in_features):
    """Deterministic synthetic parameters, padded to lane-aligned shapes.

    PyTorch nn.Linear stores weight as [out, in]; we pre-transpose to
    [in, out].  D / HIDDEN / NUM_CLASSES are zero-padded to multiples of 128
    so all matmuls and stores are lane-dense; zero padding is numerically
    inert (relu(0)=0 and zero weight rows/cols contribute nothing).
    Returns (padded_params_for_kernel, unpadded_f32_params_for_reference).
    """
    k1, k2, k3, k4 = jax.random.split(key, 4)
    w1 = jax.random.normal(k1, (in_features, HIDDEN), jnp.float32) * 0.05
    b1 = jax.random.normal(k2, (HIDDEN,), jnp.float32) * 0.05
    wsvm = jax.random.normal(k3, (HIDDEN, NUM_CLASSES), jnp.float32) * 0.05
    bsvm = jax.random.normal(k4, (NUM_CLASSES,), jnp.float32) * 0.05

    D_pad = _round_up(in_features, LANE)
    H_pad = _round_up(HIDDEN, LANE)
    C_pad = _round_up(NUM_CLASSES, LANE)

    w1_p = (jnp.zeros((D_pad, H_pad), jnp.float32)
            .at[:in_features, :HIDDEN].set(w1).astype(jnp.bfloat16))
    b1_p = jnp.zeros((1, H_pad), jnp.float32).at[0, :HIDDEN].set(b1)
    wsvm_p = (jnp.zeros((H_pad, C_pad), jnp.float32)
              .at[:HIDDEN, :NUM_CLASSES].set(wsvm).astype(jnp.bfloat16))
    bsvm_p = jnp.zeros((1, C_pad), jnp.float32).at[0, :NUM_CLASSES].set(bsvm)

    return (w1_p, b1_p, wsvm_p, bsvm_p), (w1, b1, wsvm, bsvm)


def _reference_forward(x_nchw, raw_params):
    """Pure-JAX f32 reference of the module's forward pass."""
    w1, b1, wsvm, bsvm = raw_params
    x2d = x_nchw.reshape(x_nchw.shape[0], -1).astype(jnp.float32)
    h = jnp.maximum(x2d @ w1 + b1, 0.0)
    return h @ wsvm + bsvm


# TODO(synk): the forward-hook registration / LazyLinear lazy shape inference
# are Python-side plumbing with no runtime compute; realized here as a fixed
# (stop_layer = ReLU, HIDDEN-wide) static structure.

if __name__ == "__main__":
    key = jax.random.PRNGKey(0)
    kx, kp = jax.random.split(key)

    # Small NCHW input consistent with an image classifier: [B, C, H, W]
    B, C, H, W = 2, 4, 16, 16
    x = jax.random.normal(kx, (B, C, H, W), jnp.float32)

    params, raw_params = init_params(kp, C * H * W)

    out = fashion_svm_forward(x, params)
    out = jax.block_until_ready(out)

    assert out.shape == (B, NUM_CLASSES), out.shape
    assert out.dtype == jnp.float32, out.dtype

    # Sanity check vs. pure-JAX f32 reference (bf16 weights/compute/output ->
    # loose tolerance; fine for argmax classification).
    ref = _reference_forward(x, raw_params)
    assert jnp.allclose(out, ref, rtol=5e-2, atol=5e-2), (
        float(jnp.max(jnp.abs(out - ref))))

    print("KERNEL_OK")
</pallas_src>

<mosaic_0001>
module attributes {stable_mosaic.version = 11 : i64} {
  func.func @fashion_svm_kernel(%arg0: i32, %arg1: memref<16x1024xf32, #tpu.memory_space<vmem>>, %arg2: memref<1024x128xbf16, #tpu.memory_space<vmem>>, %arg3: memref<1x128xf32, #tpu.memory_space<vmem>>, %arg4: memref<128x128xbf16, #tpu.memory_space<vmem>>, %arg5: memref<1x128xf32, #tpu.memory_space<vmem>>, %arg6: memref<16x128xbf16, #tpu.memory_space<vmem>>) attributes {dimension_semantics = [#tpu.dimension_semantics<parallel>], iteration_bounds = array<i64: 1>, scalar_prefetch = 0 : i64, scratch_operands = 0 : i64, tpu.core_type = #tpu.core_type<tc>, window_params = [{transform_indices = @transform_0, window_bounds = array<i64: 16, 1024>}, {pipeline_mode = #tpu.pipeline_mode<synchronous>, transform_indices = @transform_1, window_bounds = array<i64: 1024, 128>}, {pipeline_mode = #tpu.pipeline_mode<synchronous>, transform_indices = @transform_2, window_bounds = array<i64: 1, 128>}, {pipeline_mode = #tpu.pipeline_mode<synchronous>, transform_indices = @transform_3, window_bounds = array<i64: 128, 128>}, {pipeline_mode = #tpu.pipeline_mode<synchronous>, transform_indices = @transform_4, window_bounds = array<i64: 1, 128>}, {transform_indices = @transform_5, window_bounds = array<i64: 16, 128>}]} {
    %c0 = arith.constant 0 : index
    %c0_0 = arith.constant 0 : index
    %0 = vector.load %arg1[%c0, %c0_0] : memref<16x1024xf32, #tpu.memory_space<vmem>>, vector<16x1024xf32>
    %1 = arith.truncf %0 : vector<16x1024xf32> to vector<16x1024xbf16>
    %c0_1 = arith.constant 0 : index
    %c0_2 = arith.constant 0 : index
    %2 = vector.load %arg2[%c0_1, %c0_2] : memref<1024x128xbf16, #tpu.memory_space<vmem>>, vector<1024x128xbf16>
    %cst = arith.constant dense<0.000000e+00> : vector<16x128xf32>
    %3 = tpu.matmul %1, %2, %cst {dimension_numbers = #tpu.dot_dimension_numbers<[1], [0], [0], [1], [0, 0, 1, 1], [], []>} : vector<16x1024xbf16>, vector<1024x128xbf16>, vector<16x128xf32> -> vector<16x128xf32>
    %c0_3 = arith.constant 0 : index
    %c0_4 = arith.constant 0 : index
    %4 = vector.load %arg3[%c0_3, %c0_4] : memref<1x128xf32, #tpu.memory_space<vmem>>, vector<1x128xf32>
    %5 = vector.broadcast %4 : vector<1x128xf32> to vector<16x128xf32>
    %6 = arith.addf %3, %5 : vector<16x128xf32>
    %cst_5 = arith.constant 0.000000e+00 : f32
    %7 = vector.broadcast %cst_5 : f32 to vector<16x128xf32>
    %8 = arith.maximumf %6, %7 : vector<16x128xf32>
    %9 = arith.truncf %8 : vector<16x128xf32> to vector<16x128xbf16>
    %c0_6 = arith.constant 0 : index
    %c0_7 = arith.constant 0 : index
    %10 = vector.load %arg4[%c0_6, %c0_7] : memref<128x128xbf16, #tpu.memory_space<vmem>>, vector<128x128xbf16>
    %cst_8 = arith.constant dense<0.000000e+00> : vector<16x128xf32>
    %11 = tpu.matmul %9, %10, %cst_8 {dimension_numbers = #tpu.dot_dimension_numbers<[1], [0], [0], [1], [0, 0, 1, 1], [], []>} : vector<16x128xbf16>, vector<128x128xbf16>, vector<16x128xf32> -> vector<16x128xf32>
    %c0_9 = arith.constant 0 : index
    %c0_10 = arith.constant 0 : index
    %12 = vector.load %arg5[%c0_9, %c0_10] : memref<1x128xf32, #tpu.memory_space<vmem>>, vector<1x128xf32>
    %13 = vector.broadcast %12 : vector<1x128xf32> to vector<16x128xf32>
    %14 = arith.addf %11, %13 : vector<16x128xf32>
    %15 = arith.truncf %14 : vector<16x128xf32> to vector<16x128xbf16>
    %c0_11 = arith.constant 0 : index
    %c0_12 = arith.constant 0 : index
    %16 = vector.load %arg6[%c0_11, %c0_12] : memref<16x128xbf16, #tpu.memory_space<vmem>>, vector<16x128xbf16>
    tpu.vector_store %arg6[%c0_11, %c0_12], %15 {strides = array<i32>} : memref<16x128xbf16, #tpu.memory_space<vmem>>, vector<16x128xbf16>,
    return
  }
  func.func @transform_0(%arg0: i32) -> (i32, i32) {
    %c0_i32 = arith.constant 0 : i32
    %c0_i32_0 = arith.constant 0 : i32
    return %arg0, %c0_i32 : i32, i32
  }
  func.func @transform_1(%arg0: i32) -> (i32, i32) {
    %c0_i32 = arith.constant 0 : i32
    %c0_i32_0 = arith.constant 0 : i32
    %c0_i32_1 = arith.constant 0 : i32
    return %c0_i32, %c0_i32_0 : i32, i32
  }
  func.func @transform_2(%arg0: i32) -> (i32, i32) {
    %c0_i32 = arith.constant 0 : i32
    %c0_i32_0 = arith.constant 0 : i32
    %c0_i32_1 = arith.constant 0 : i32
    return %c0_i32, %c0_i32_0 : i32, i32
  }
  func.func @transform_3(%arg0: i32) -> (i32, i32) {
    %c0_i32 = arith.constant 0 : i32
    %c0_i32_0 = arith.constant 0 : i32
    %c0_i32_1 = arith.constant 0 : i32
    return %c0_i32, %c0_i32_0 : i32, i32
  }
  func.func @transform_4(%arg0: i32) -> (i32, i32) {
    %c0_i32 = arith.constant 0 : i32
    %c0_i32_0 = arith.constant 0 : i32
    %c0_i32_1 = arith.constant 0 : i32
    return %c0_i32, %c0_i32_0 : i32, i32
  }
  func.func @transform_5(%arg0: i32) -> (i32, i32) {
    %c0_i32 = arith.constant 0 : i32
    %c0_i32_0 = arith.constant 0 : i32
    return %arg0, %c0_i32 : i32, i32
  }
}

</mosaic_0001>

<bundles_post_ra>
// kernel: tpu_custom_call.1
= control target key start
LH: loop header
LB: loop body
LE: loop exit
PB: predicated region body
PF: predicated region fallthrough
CT: control target
= control target key end

     0   :  { %10 = vsyncpa [#allocation3], 0  ;;  %s1391_s0 = inlined_call_operand.hbm [shape: f32[16,1024], index: 0, kind: input, shape index: {}]   ;;  %s1392_s1 = inlined_call_operand.hbm [shape: bf16[1024,128], index: 1, kind: input, shape index: {}]   ;;  %s1393_s2 = inlined_call_operand.vmem [shape: f32[1,128], index: 2, kind: input, shape index: {}]   ;;  %s1394_s3 = inlined_call_operand.hbm [shape: bf16[128,128], index: 3, kind: input, shape index: {}]   ;;  %s1395_s4 = inlined_call_operand.vmem [shape: f32[1,128], index: 4, kind: input, shape index: {}]   ;;  %s1396_s5 = inlined_call_operand.hbm [shape: bf16[16,128], index: 5, kind: output, shape index: {}]  }
   0x1   :  { %11 = vsyncpa [#allocation6], 0 }
   0x2   :  { %12 = vsyncpa [#allocation4], 0  ;;  %s1288_s18 = smov [#allocation5]   ;;  %s1194_s22 = scalar_lea.hbm %s1392_s1, 8192 }
   0x3   :  { %s30_s19 = sshll.u32 %s1288_s18, 4  ;;  %p1195_p0 = scmp.ne.s32.totalorder %s1392_s1, %s1194_s22  ;;  %s31_s19 = int_to_ptr.vmem [resolvable:$true] %s30_s19 }
   0x4   :  { %p1198_p1 = scmp.lt.u32.totalorder %s1194_s22, %s1392_s1 }
   0x6   :  { %p1200_p2 = pnand %p1198_p1, %p1195_p0 }
   0x8   :  { %1203 = shalt.err (!%p1200_p2)
}
   0x9   :  { %s1204_s27 = scalar_lea.vmem %s31_s19, 8192  ;;  %p1209_p4 = scmp.lt.s32.totalorder %s31_s19, %s31_s19 }
   0xa   :  { %p1205_p3 = scmp.ne.s32.totalorder %s31_s19, %s1204_s27  ;;  %p1210_p5 = scmp.lt.s32.totalorder %s1204_s27, %s1204_s27 }
   0xc   :  { %p1211_p6 = por %p1210_p5, %p1209_p4 }
   0xe   :  { %p1212_p7 = pnand %p1211_p6, %p1205_p3 }
  0x10   :  { %1215 = shalt.err (!%p1212_p7)
}
  0x11   :  { %s1289_s28 = smov 64   ;;  %s1290_s29 = smov 4  }
  0x12   :  { %36 = dma.hbm_to_vmem [thread:$0]  %s1392_s1, 8192, %s31_s19, [#allocation6], %s1289_s28, %s1289_s28, %s1290_s29  }
  0x13   :  { %s1291_s7 = smov [#allocation2]   ;;  %s1216_s11 = scalar_lea.hbm %s1391_s0, 2048 }
  0x14   :  { %s18_s8 = sshll.u32 %s1291_s7, 4  ;;  %p1217_p8 = scmp.ne.s32.totalorder %s1391_s0, %s1216_s11  ;;  %s19_s8 = int_to_ptr.vmem [resolvable:$true] %s18_s8 }
  0x15   :  { %p1220_p9 = scmp.lt.u32.totalorder %s1216_s11, %s1391_s0 }
  0x17   :  { %p1222_p10 = pnand %p1220_p9, %p1217_p8 }
  0x19   :  { %1225 = shalt.err (!%p1222_p10)
}
  0x1a   :  { %s1226_s16 = scalar_lea.vmem %s19_s8, 2048  ;;  %p1231_p12 = scmp.lt.s32.totalorder %s19_s8, %s19_s8 }
  0x1b   :  { %p1227_p11 = scmp.ne.s32.totalorder %s19_s8, %s1226_s16  ;;  %p1232_p13 = scmp.lt.s32.totalorder %s1226_s16, %s1226_s16 }
  0x1d   :  { %p1233_p0 = por %p1232_p13, %p1231_p12 }
  0x1f   :  { %p1234_p1 = pnand %p1233_p0, %p1227_p11 }
  0x21   :  { %1237 = shalt.err (!%p1234_p1)
}
  0x22   :  { %s1292_s1 = smov 1024   ;;  %s1293_s19 = smov [#allocation7]  }
  0x23   :  { %24 = dma.hbm_to_vmem [thread:$0]  %s1391_s0, 2048, %s19_s8, [#allocation3], %s1292_s1, %s1292_s1, %s1289_s28  }
  0x24   :  { %s44_s20 = sshll.u32 %s1293_s19, 4  ;;  %s1238_s23 = scalar_lea.hbm %s1394_s3, 1024  ;;  %s45_s20 = int_to_ptr.vmem [resolvable:$true] %s44_s20 }
  0x25   :  { %p1239_p2 = scmp.ne.s32.totalorder %s1394_s3, %s1238_s23  ;;  %p1242_p3 = scmp.lt.u32.totalorder %s1238_s23, %s1394_s3 }
  0x27   :  { %p1244_p4 = pnand %p1242_p3, %p1239_p2 }
  0x29   :  { %1247 = shalt.err (!%p1244_p4)
}
  0x2a   :  { %s1248_s30 = scalar_lea.vmem %s45_s20, 1024  ;;  %p1253_p6 = scmp.lt.s32.totalorder %s45_s20, %s45_s20 }
  0x2b   :  { %p1249_p5 = scmp.ne.s32.totalorder %s45_s20, %s1248_s30  ;;  %p1254_p7 = scmp.lt.s32.totalorder %s1248_s30, %s1248_s30 }
  0x2d   :  { %p1255_p8 = por %p1254_p7, %p1253_p6 }
  0x2f   :  { %p1256_p9 = pnand %p1255_p8, %p1249_p5 }
  0x31   :  { %1259 = shalt.err (!%p1256_p9)
}
  0x32   :  { %50 = dma.hbm_to_vmem [thread:$0]  %s1394_s3, 1024, %s45_s20, [#allocation6], %s1289_s28, %s1289_s28, %s1290_s29  }
  0x33   :  { %1282 = dma.done.wait [#allocation3], 2048  }
  0x34   :  { %1283 = vsyncadd [#allocation3], 4294965248 }
  0x35   :  { %1284 = dma.done.wait [#allocation6], 9216  }
  0x36   :  { %1285 = vsyncadd [#allocation6], 4294958080  ;;  %v1122_v0 = vld [vmem:[#allocation5 + $0x40] sm:$0xff]   ;;  %v1126_v4 = vld [vmem:[#allocation5 + $0x48] sm:$0xff]   ;;  %vm1295_vm0 = vmmov 0   ;;  %s1296_s9 = smov [#allocation8]  }
  0x37   :  { %v1123_v1 = vld [vmem:[#allocation5 + $0xc0] sm:$0xff]   ;;  %996 = vmatprep.subr.bf16.mxu0 %v1122_v0  ;;  %v1127_v5 = vld [vmem:[#allocation5 + $0xc8] sm:$0xff]   ;;  %v1130_v8 = vld [vmem:[#allocation5 + $0x50] sm:$0xff]   ;;  %s900_s10 = sshll.u32 %s1296_s9, 4  ;;  %s901_s10 = int_to_ptr.vmem [resolvable:$true] %s900_s10 }
  0x38   :  { %v1124_v2 = vld [vmem:[#allocation5] sm:$0xff]   ;;  %1018 = vmatprep.subr.bf16.mxu1 %v1123_v1  ;;  %v1128_v6 = vld [vmem:[#allocation5 + $0x8] sm:$0xff]   ;;  %v1131_v9 = vld [vmem:[#allocation5 + $0xd0] sm:$0xff]   ;;  %s1260_s11 = scalar_lea.vmem %s901_s10, 128  ;;  %p1265_p11 = scmp.lt.s32.totalorder %s901_s10, %s901_s10 }
  0x39   :  { %v1125_v3 = vld [vmem:[#allocation5 + $0x80] sm:$0xff]   ;;  %997 = vmatpush3.bf16.msra.mxu0 %v1124_v2  ;;  %v1129_v7 = vld [vmem:[#allocation5 + $0x88] sm:$0xff]   ;;  %v1132_v10 = vld [vmem:[#allocation5 + $0x10] sm:$0xff]   ;;  %p1261_p10 = scmp.ne.s32.totalorder %s901_s10, %s1260_s11  ;;  %p1266_p12 = scmp.lt.s32.totalorder %s1260_s11, %s1260_s11 }
  0x3a   :  { %1019 = vmatpush3.bf16.msra.mxu1 %v1125_v3  ;;  %998 = vmatprep.subr.bf16.mxu0 %v1126_v4  ;;  %v1133_v11 = vld [vmem:[#allocation5 + $0x90] sm:$0xff]   ;;  %v1134_v12 = vld [vmem:[#allocation5 + $0x58] sm:$0xff]   ;;  %v1138_v16 = vld [vmem:[#allocation5 + $0x60] sm:$0xff]  }
  0x3b   :  { %1020 = vmatprep.subr.bf16.mxu1 %v1127_v5  ;;  %v1135_v13 = vld [vmem:[#allocation5 + $0xd8] sm:$0xff]   ;;  %v1139_v17 = vld [vmem:[#allocation5 + $0xe0] sm:$0xff]   ;;  %v1142_v20 = vld [vmem:[#allocation5 + $0x68] sm:$0xff]   ;;  %p1267_p13 = por %p1266_p12, %p1265_p11 }
  0x3c   :  { %v1136_v14 = vld [vmem:[#allocation5 + $0x18] sm:$0xff]   ;;  %v1140_v18 = vld [vmem:[#allocation5 + $0x20] sm:$0xff]   ;;  %v1143_v21 = vld [vmem:[#allocation5 + $0xe8] sm:$0xff]  }
  0x3d   :  { %999 = vmatpush3.bf16.msra.mxu0 %v1128_v6  ;;  %v1137_v15 = vld [vmem:[#allocation5 + $0x98] sm:$0xff]   ;;  %v1141_v19 = vld [vmem:[#allocation5 + $0xa0] sm:$0xff]   ;;  %v1144_v22 = vld [vmem:[#allocation5 + $0x28] sm:$0xff]   ;;  %p1268_p0 = pnand %p1267_p13, %p1261_p10 }
  0x3e   :  { %1021 = vmatpush3.bf16.msra.mxu1 %v1129_v7  ;;  %1000 = vmatprep.subr.bf16.mxu0 %v1130_v8  ;;  %v1145_v23 = vld [vmem:[#allocation5 + $0xa8] sm:$0xff]   ;;  %v1146_v24 = vld [vmem:[#allocation5 + $0x70] sm:$0xff]   ;;  %v1150_v28 = vld [vmem:[#allocation5 + $0x78] sm:$0xff]  }
  0x3f   :  { %1022 = vmatprep.subr.bf16.mxu1 %v1131_v9  ;;  %v1147_v25 = vld [vmem:[#allocation5 + $0xf0] sm:$0xff]   ;;  %v1151_v29 = vld [vmem:[#allocation5 + $0xf8] sm:$0xff]   ;;  %v64_v32 = vld [vmem:[#allocation2 + $0x8] sm:$0xff] }
  0x40   :  { %v1148_v26 = vld [vmem:[#allocation5 + $0x30] sm:$0xff]   ;;  %v1152_v30 = vld [vmem:[#allocation5 + $0x38] sm:$0xff]   ;;  %v72_v33 = vld [vmem:[#allocation2 + $0x48] sm:$0xff] }
  0x41   :  { %1001 = vmatpush3.bf16.msra.mxu0 %v1132_v10  ;;  %v1149_v27 = vld [vmem:[#allocation5 + $0xb0] sm:$0xff]   ;;  %v1153_v31 = vld [vmem:[#allocation5 + $0xb8] sm:$0xff]   ;;  %v80_v35 = vpack.c.bf16 %v72_v33, %v64_v32  ;;  %v63_v37 = vld [vmem:[#allocation2] sm:$0xff] }
  0x42   :  { %1023 = vmatpush3.bf16.msra.mxu1 %v1133_v11  ;;  %1002 = vmatprep.subr.bf16.mxu0 %v1134_v12  ;;  %v66_v34 = vld [vmem:[#allocation2 + $0x18] sm:$0xff]  ;;  %v71_v38 = vld [vmem:[#allocation2 + $0x40] sm:$0xff]  ;;  %v65_v41 = vld [vmem:[#allocation2 + $0x10] sm:$0xff] }
  0x43   :  { %1024 = vmatprep.subr.bf16.mxu1 %v1135_v13  ;;  %v74_v36 = vld [vmem:[#allocation2 + $0x58] sm:$0xff]  ;;  %v79_v40 = vpack.c.bf16 %v71_v38, %v63_v37  ;;  %v73_v42 = vld [vmem:[#allocation2 + $0x50] sm:$0xff]  ;;  %638 = vmatprep.mubr.bf16.mxu0 %v80_v35  ;;  %v1154_v44 = vld [vmem:[#allocation5 + $0x140] sm:$0xff]  }
  0x44   :  { %v82_v39 = vpack.c.bf16 %v74_v36, %v66_v34  ;;  %v81_v43 = vpack.c.bf16 %v73_v42, %v65_v41  ;;  %v1155_v45 = vld [vmem:[#allocation5 + $0x1c0] sm:$0xff]   ;;  %v1158_v48 = vld [vmem:[#allocation5 + $0x148] sm:$0xff]   ;;  %v1162_v52 = vld [vmem:[#allocation5 + $0x150] sm:$0xff]  }
  0x45   :  { %1003 = vmatpush3.bf16.msra.mxu0 %v1136_v14  ;;  %v1156_v46 = vld [vmem:[#allocation5 + $0x100] sm:$0xff]   ;;  %v1159_v49 = vld [vmem:[#allocation5 + $0x1c8] sm:$0xff]   ;;  %v1163_v53 = vld [vmem:[#allocation5 + $0x1d0] sm:$0xff]  }
  0x46   :  { %1025 = vmatpush3.bf16.msra.mxu1 %v1137_v15  ;;  %1004 = vmatprep.subr.bf16.mxu0 %v1138_v16  ;;  %v1157_v47 = vld [vmem:[#allocation5 + $0x180] sm:$0xff]   ;;  %v1160_v50 = vld [vmem:[#allocation5 + $0x108] sm:$0xff]   ;;  %v1164_v54 = vld [vmem:[#allocation5 + $0x110] sm:$0xff]  }
  0x47   :  { %1026 = vmatprep.subr.bf16.mxu1 %v1139_v17  ;;  %679 = vmatprep.mubr.bf16.mxu1 %v82_v39  ;;  %v1161_v51 = vld [vmem:[#allocation5 + $0x188] sm:$0xff]   ;;  %v1165_v55 = vld [vmem:[#allocation5 + $0x190] sm:$0xff]   ;;  %v1166_v56 = vld [vmem:[#allocation5 + $0x158] sm:$0xff]  }
  0x48   :  { %v1167_v57 = vld [vmem:[#allocation5 + $0x1d8] sm:$0xff]   ;;  %v1170_v60 = vld [vmem:[#allocation5 + $0x160] sm:$0xff]   ;;  %v1174_v0 = vld [vmem:[#allocation5 + $0x168] sm:$0xff]  }
  0x49   :  { %1005 = vmatpush3.bf16.msra.mxu0 %v1140_v18  ;;  %v1168_v58 = vld [vmem:[#allocation5 + $0x118] sm:$0xff]   ;;  %v1171_v61 = vld [vmem:[#allocation5 + $0x1e0] sm:$0xff]   ;;  %v1175_v1 = vld [vmem:[#allocation5 + $0x1e8] sm:$0xff]  }
  0x4a   :  { %1027 = vmatpush3.bf16.msra.mxu1 %v1141_v19  ;;  %1006 = vmatprep.subr.bf16.mxu0 %v1142_v20  ;;  %v1169_v59 = vld [vmem:[#allocation5 + $0x198] sm:$0xff]   ;;  %v1172_v62 = vld [vmem:[#allocation5 + $0x120] sm:$0xff]   ;;  %v1176_v2 = vld [vmem:[#allocation5 + $0x128] sm:$0xff]  }
  0x4b   :  { %1028 = vmatprep.subr.bf16.mxu1 %v1143_v21  ;;  %v1173_v63 = vld [vmem:[#allocation5 + $0x1a0] sm:$0xff]   ;;  %v1177_v3 = vld [vmem:[#allocation5 + $0x1a8] sm:$0xff]   ;;  %v1178_v4 = vld [vmem:[#allocation5 + $0x170] sm:$0xff]  }
  0x4c   :  { %v1179_v5 = vld [vmem:[#allocation5 + $0x1f0] sm:$0xff]   ;;  %v1182_v8 = vld [vmem:[#allocation5 + $0x178] sm:$0xff]   ;;  %v68_v12 = vld [vmem:[#allocation2 + $0x28] sm:$0xff] }
  0x4d   :  { %1007 = vmatpush3.bf16.msra.mxu0 %v1144_v22  ;;  %v1180_v6 = vld [vmem:[#allocation5 + $0x130] sm:$0xff]   ;;  %v1183_v9 = vld [vmem:[#allocation5 + $0x1f8] sm:$0xff]   ;;  %v76_v13 = vld [vmem:[#allocation2 + $0x68] sm:$0xff] }
  0x4e   :  { %1029 = vmatpush3.bf16.msra.mxu1 %v1145_v23  ;;  %1008 = vmatprep.subr.bf16.mxu0 %v1146_v24  ;;  %v1181_v7 = vld [vmem:[#allocation5 + $0x1b0] sm:$0xff]   ;;  %v1184_v10 = vld [vmem:[#allocation5 + $0x138] sm:$0xff]   ;;  %v84_v16 = vpack.c.bf16 %v76_v13, %v68_v12  ;;  %v67_v18 = vld [vmem:[#allocation2 + $0x20] sm:$0xff] }
  0x4f   :  { %1030 = vmatprep.subr.bf16.mxu1 %v1147_v25  ;;  %v1185_v11 = vld [vmem:[#allocation5 + $0x1b8] sm:$0xff]   ;;  %v75_v19 = vld [vmem:[#allocation2 + $0x60] sm:$0xff]  ;;  %v69_v20 = vld [vmem:[#allocation2 + $0x30] sm:$0xff]  ;;  %v1294_v25 = vmov 0.0  }
  0x50   :  { %v70_v14 = vld [vmem:[#allocation2 + $0x38] sm:$0xff]  ;;  %v83_v21 = vpack.c.bf16 %v75_v19, %v67_v18  ;;  %v77_v22 = vld [vmem:[#allocation2 + $0x70] sm:$0xff]  ;;  %v1186_v24 = vld [vmem:[#allocation7] sm:$0xff]  }
  0x51   :  { %1009 = vmatpush3.bf16.msra.mxu0 %v1148_v26  ;;  %v78_v15 = vld [vmem:[#allocation2 + $0x78] sm:$0xff]  ;;  %v85_v23 = vpack.c.bf16 %v77_v22, %v69_v20  ;;  %v1187_v26 = vld [vmem:[#allocation7 + $0x8] sm:$0xff]   ;;  %v913_v35 = vld [vmem:[%s1393_s2] ss:$0 sm:$0xff] }
  0x52   :  { %1031 = vmatpush3.bf16.msra.mxu1 %v1149_v27  ;;  %1010 = vmatprep.subr.bf16.mxu0 %v1150_v28  ;;  %v86_v17 = vpack.c.bf16 %v78_v15, %v70_v14  ;;  %v1188_v27 = vld [vmem:[#allocation7 + $0x10] sm:$0xff]   ;;  %v1189_v28 = vld [vmem:[#allocation7 + $0x18] sm:$0xff]  }
  0x53   :  { %1032 = vmatprep.subr.bf16.mxu1 %v1151_v29  ;;  %v1190_v29 = vld [vmem:[#allocation7 + $0x20] sm:$0xff]   ;;  %v1193_v32 = vld [vmem:[#allocation7 + $0x38] sm:$0xff]  }
  0x55   :  { %1011 = vmatpush3.bf16.msra.mxu0 %v1152_v30  ;;  %v1191_v30 = vld [vmem:[#allocation7 + $0x28] sm:$0xff]  }
  0x56   :  { %1033 = vmatpush3.bf16.msra.mxu1 %v1153_v31  ;;  %1040 = vmatprep.subr.bf16.mxu0 %v1154_v44  ;;  %v1192_v31 = vld [vmem:[#allocation7 + $0x30] sm:$0xff]  }
  0x57   :  { %1062 = vmatprep.subr.bf16.mxu1 %v1155_v45 }
  0x58   :  { %639 = vmatmul.mubr.bf16.vlgmr.msra.gmra.mrb[0].mxu0 %v79_v40 }
  0x59   :  { %680 = vmatmul.mubr.bf16.vlgmr.msra.gmra.mrb[0].mxu1 %v81_v43  ;;  %1041 = vmatpush3.bf16.msra.mxu0 %v1156_v46 }
  0x5a   :  { %1063 = vmatpush3.bf16.msra.mxu1 %v1157_v47  ;;  %1042 = vmatprep.subr.bf16.mxu0 %v1158_v48 }
  0x5b   :  { %1064 = vmatprep.subr.bf16.mxu1 %v1159_v49  ;;  %720 = vmatprep.mubr.bf16.mxu0 %v84_v16 }
  0x5c   :  { %761 = vmatprep.mubr.bf16.mxu1 %v86_v17 }
  0x5d   :  { %1043 = vmatpush3.bf16.msra.mxu0 %v1160_v50 }
  0x5e   :  { %1065 = vmatpush3.bf16.msra.mxu1 %v1161_v51  ;;  %1044 = vmatprep.subr.bf16.mxu0 %v1162_v52 }
  0x5f   :  { %1066 = vmatprep.subr.bf16.mxu1 %v1163_v53 }
  0x61   :  { %1045 = vmatpush3.bf16.msra.mxu0 %v1164_v54 }
  0x62   :  { %1067 = vmatpush3.bf16.msra.mxu1 %v1165_v55  ;;  %1046 = vmatprep.subr.bf16.mxu0 %v1166_v56 }
  0x63   :  { %1068 = vmatprep.subr.bf16.mxu1 %v1167_v57 }
  0x65   :  { %1047 = vmatpush3.bf16.msra.mxu0 %v1168_v58 }
  0x66   :  { %1069 = vmatpush3.bf16.msra.mxu1 %v1169_v59  ;;  %1048 = vmatprep.subr.bf16.mxu0 %v1170_v60 }
  0x67   :  { %1070 = vmatprep.subr.bf16.mxu1 %v1171_v61 }
  0x69   :  { %1049 = vmatpush3.bf16.msra.mxu0 %v1172_v62 }
  0x6a   :  { %1071 = vmatpush3.bf16.msra.mxu1 %v1173_v63  ;;  %1050 = vmatprep.subr.bf16.mxu0 %v1174_v0 }
  0x6b   :  { %1072 = vmatprep.subr.bf16.mxu1 %v1175_v1 }
  0x6d   :  { %1051 = vmatpush3.bf16.msra.mxu0 %v1176_v2 }
  0x6e   :  { %1073 = vmatpush3.bf16.msra.mxu1 %v1177_v3  ;;  %1052 = vmatprep.subr.bf16.mxu0 %v1178_v4 }
  0x6f   :  { %1074 = vmatprep.subr.bf16.mxu1 %v1179_v5  ;;  %v978_v5 = vld [vmem:[%s1395_s4] ss:$0 sm:$0xff] }
  0x71   :  { %1053 = vmatpush3.bf16.msra.mxu0 %v1180_v6 }
  0x72   :  { %1075 = vmatpush3.bf16.msra.mxu1 %v1181_v7  ;;  %1054 = vmatprep.subr.bf16.mxu0 %v1182_v8 }
  0x73   :  { %1076 = vmatprep.subr.bf16.mxu1 %v1183_v9 }
  0x75   :  { %1055 = vmatpush3.bf16.msra.mxu0 %v1184_v10 }
  0x76   :  { %1077 = vmatpush3.bf16.msra.mxu1 %v1185_v11  ;;  %1093 = vmatprep.subr.bf16.mxu0 %v1294_v25 }
  0x78   :  { %721 = vmatmul.mubr.bf16.vlgmr.msra.gmra.mrb[4].mxu0 %v83_v21 }
  0x79   :  { %762 = vmatmul.mubr.bf16.vlgmr.msra.gmra.mrb[4].mxu1 %v85_v23  ;;  %1094 = vmatpush3.bf16.msra.mxu0 %v1186_v24 }
  0x7a   :  { %1095 = vmatprep.subr.bf16.mxu0 %v1294_v25  ;;  %1109 = vmatprep.mubr.msk.bf16.mxu0 %vm1295_vm0, %v1294_v25 }
  0x7d   :  { %1096 = vmatpush3.bf16.msra.mxu0 %v1187_v26 }
  0x7e   :  { %1097 = vmatprep.subr.bf16.mxu0 %v1294_v25 }
  0x81   :  { %1098 = vmatpush3.bf16.msra.mxu0 %v1188_v27 }
  0x82   :  { %1099 = vmatprep.subr.bf16.mxu0 %v1294_v25 }
  0x85   :  { %1100 = vmatpush3.bf16.msra.mxu0 %v1189_v28 }
  0x86   :  { %1101 = vmatprep.subr.bf16.mxu0 %v1294_v25 }
  0x89   :  { %1102 = vmatpush3.bf16.msra.mxu0 %v1190_v29 }
  0x8a   :  { %1103 = vmatprep.subr.bf16.mxu0 %v1294_v25 }
  0x8d   :  { %1104 = vmatpush3.bf16.msra.mxu0 %v1191_v30 }
  0x8e   :  { %1105 = vmatprep.subr.bf16.mxu0 %v1294_v25 }
  0x91   :  { %1106 = vmatpush3.bf16.msra.mxu0 %v1192_v31 }
  0x92   :  { %1107 = vmatprep.subr.bf16.mxu0 %v1294_v25 }
  0x95   :  { %1108 = vmatpush3.bf16.msra.mxu0 %v1193_v32 }
 0x12b   :  { %v1012_v33 = vpop.f32.mrb[0].mxu0 }
 0x12c   :  { %v1034_v34 = vpop.f32.mrb[0].mxu1  ;;  %v1013_v36 = vpop.f32.mrb[1].mxu0 }
 0x12d   :  { %v1014_v37 = vadd.f32 %v1013_v36, %v1012_v33  ;;  %v1035_v38 = vpop.f32.mrb[1].mxu1  ;;  %v1015_v39 = vpop.f32.mrb[2].mxu0 }
 0x12e   :  { %v1036_v40 = vadd.f32 %v1035_v38, %v1034_v34  ;;  %v1037_v41 = vpop.f32.mrb[2].mxu1  ;;  %v1016_v42 = vpop.f32.mrb[3].mxu0 }
 0x12f   :  { %v641_v43 = vadd.f32 %v1014_v37, %v913_v35  ;;  %v1017_v44 = vadd.f32 %v1016_v42, %v1015_v39  ;;  %v1038_v45 = vpop.f32.mrb[3].mxu1 }
 0x130   :  { %v1039_v46 = vadd.f32 %v1038_v45, %v1037_v41 }
 0x131   :  { %v682_v47 = vadd.f32 %v1036_v40, %v641_v43  ;;  %v644_v48 = vadd.f32 %v1017_v44, %v913_v35 }
 0x133   :  { %v685_v49 = vadd.f32 %v1039_v46, %v644_v48 }
 0x14b   :  { %v1056_v50 = vpop.f32.mrb[4].mxu0 }
 0x14c   :  { %v1078_v51 = vpop.f32.mrb[4].mxu1  ;;  %v1057_v52 = vpop.f32.mrb[5].mxu0 }
 0x14d   :  { %v1058_v53 = vadd.f32 %v1057_v52, %v1056_v50  ;;  %v1079_v54 = vpop.f32.mrb[5].mxu1  ;;  %v1059_v55 = vpop.f32.mrb[6].mxu0 }
 0x14e   :  { %v1080_v56 = vadd.f32 %v1079_v54, %v1078_v51  ;;  %v1081_v57 = vpop.f32.mrb[6].mxu1  ;;  %v1060_v58 = vpop.f32.mrb[7].mxu0 }
 0x14f   :  { %v723_v59 = vadd.f32 %v1058_v53, %v682_v47  ;;  %v1061_v60 = vadd.f32 %v1060_v58, %v1059_v55  ;;  %v1082_v61 = vpop.f32.mrb[7].mxu1 }
 0x150   :  { %v1083_v62 = vadd.f32 %v1082_v61, %v1081_v57 }
 0x151   :  { %v764_v63 = vadd.f32 %v1080_v56, %v723_v59  ;;  %v726_v0 = vadd.f32 %v1061_v60, %v685_v49 }
 0x153   :  { %v767_v1 = vadd.f32 %v1083_v62, %v726_v0  ;;  %v770_v2 = vmax.f32 %v764_v63, 0.0 }
 0x155   :  { %v771_v3 = vmax.f32 %v767_v1, 0.0 }
 0x157   :  { %v772_v4 = vpack.c.bf16 %v771_v3, %v770_v2 }
 0x159   :  { %1110 = vmatmul.mubr.bf16.vlgmr.msra.gmra.mrb[8].mxu0 %v772_v4 }
 0x22c   :  { %v878_v6 = vpop.f32.mrb[8].mxu0 }
 0x22d   :  { %v1111_v7 = vpop.f32.mrb[9].mxu0  ;;  %v879_v9 = vadd.f32 %v978_v5, %v878_v6 }
 0x22e   :  { %v881_v8 = vpop.f32.mrb[10].mxu0 }
 0x22f   :  { %v882_v10 = vadd.f32 %v978_v5, %v881_v8  ;;  %v1112_v11 = vpop.f32.mrb[11].mxu0 }
 0x231   :  { %v994_v12 = vpack.c.bf16 %v882_v10, %v879_v9 }
 0x233   :  { %995 = vst [vmem:[#allocation8] sm:$0xff] %v994_v12  }
 0x234   :  { %1271 = shalt.err (!%p1268_p0)
}
 0x235   :  { %s1272_s13 = scalar_lea.hbm %s1396_s5, 128 }
 0x236   :  { %p1273_p1 = scmp.ne.s32.totalorder %s1396_s5, %s1272_s13  ;;  %p1276_p2 = scmp.lt.u32.totalorder %s1272_s13, %s1396_s5 }
 0x238   :  { %p1278_p3 = pnand %p1276_p2, %p1273_p1 }
 0x23a   :  { %1281 = shalt.err (!%p1278_p3)
}
 0x23b   :  { %906 = dma.vmem_to_hbm [thread:$0]  %s901_s10, 128, %s1396_s5, [#allocation4], %s1289_s28, %s1289_s28, %s1290_s29  }
 0x23c   :  { %1286 = dma.done.wait [#allocation4], 128  }
 0x23d   :  { %1287 = vsyncadd [#allocation4], 4294967168 }
 0x23e   :  { %910 = vsyncpa [#allocation3], 1 }
 0x23f   :  { %911 = vsyncpa [#allocation6], 1 }
 0x240   :  { %912 = vsyncpa [#allocation4], 1 }

</bundles_post_ra>
